<compile_context>
chip_gen: v7x
topology: tpu7x:2x2x1
jax: 0.10.0
libtpu: 0.0.40
codegen_flags: <defaults>
</compile_context>

<pallas_src>
import jax
import jax.numpy as jnp
from jax.experimental import pallas as pl
from jax.experimental.pallas import tpu as pltpu


def _disp_regressor_kernel(cost_ref, raw_ref, conf_ref, out_ref):
    """One (batch, spatial-tile) grid step.

    cost_ref:                  (D, TILE)   cost slab, spatial dims flattened
    raw_ref / conf_ref / out_ref: (1, TILE)
    """
    D = cost_ref.shape[0]

    # ---- pass 1: running max of -cost over the disparity axis (stable softmax) ----
    # D is small and static, so the Python loop is a static unroll.
    m = -cost_ref[0:1, :].astype(jnp.float32)
    for d in range(1, D):
        m = jnp.maximum(m, -cost_ref[d:d + 1, :].astype(jnp.float32))

    # ---- pass 2: accumulate softmax denominator and disparity-weighted numerator ----
    # Per-D-slice accumulation: avoids materializing exp(-cost) / iota / cand*e volumes.
    denom = jnp.zeros_like(m)
    weighted = jnp.zeros_like(m)
    for d in range(D):
        e_d = jnp.exp(-cost_ref[d:d + 1, :].astype(jnp.float32) - m)
        denom = denom + e_d
        if d > 0:  # candidate disparity 0 contributes nothing to the weighted sum
            weighted = weighted + jnp.float32(d) * e_d

    prelim = weighted * pl.reciprocal(denom, approx=False)

    # Confidence fusion with the raw disparity.
    conf = conf_ref[...].astype(jnp.float32)
    raw = raw_ref[...].astype(jnp.float32)
    out_ref[...] = ((1.0 - conf) * prelim + conf * raw).astype(out_ref.dtype)


def _choose_tile(D, S, itemsize, vmem_budget_bytes=12 * 1024 * 1024):
    """Lane-dense spatial tile: multiple of 128, sized so the double-buffered
    (D, TILE) cost block stays well inside the scoped-VMEM budget on all gens."""
    max_tile_by_vmem = vmem_budget_bytes // (2 * D * itemsize)
    max_tile_by_vmem = max(128, (max_tile_by_vmem // 128) * 128)
    s_ceil_128 = -(-S // 128) * 128
    return min(8192, max_tile_by_vmem, s_ceil_128)


def disp_regressor(cost, raw_disp, conf, fusion=True):
    """Pallas implementation of DispRegressor.forward.

    cost:     (B, D, H, W)   (f32 or bf16; math is done in f32 in-kernel)
    raw_disp: (B, 1, H, W)
    conf:     (B, 1, H, W)
    returns:  (B, 1, H, W)
    """
    B, D, H, W = cost.shape
    assert raw_disp.shape == (B, 1, H, W)
    assert conf.shape == (B, 1, H, W)

    if not fusion:
        # (1 - 0) * prelim + 0 * raw == prelim  -> reuse the same kernel.
        conf = jnp.zeros_like(conf)

    S = H * W
    out_dtype = jnp.result_type(cost.dtype, raw_disp.dtype, conf.dtype)

    # Flatten H*W so the lane axis is large and lane-dense.
    cost_f = cost.reshape(B, D, S)
    raw_f = raw_disp.reshape(B, 1, S)
    conf_f = conf.reshape(B, 1, S)

    tile = _choose_tile(D, S, jnp.dtype(cost.dtype).itemsize)
    num_tiles = -(-S // tile)
    S_pad = num_tiles * tile
    if S_pad != S:
        pad = ((0, 0), (0, 0), (0, S_pad - S))
        cost_f = jnp.pad(cost_f, pad)
        raw_f = jnp.pad(raw_f, pad)
        conf_f = jnp.pad(conf_f, pad)

    out_flat = pl.pallas_call(
        _disp_regressor_kernel,
        out_shape=jax.ShapeDtypeStruct((B, 1, S_pad), out_dtype),
        grid_spec=pltpu.PrefetchScalarGridSpec(
            num_scalar_prefetch=0,
            grid=(B, num_tiles),
            in_specs=[
                # batch dim squeezed -> kernel sees (D, TILE) / (1, TILE)
                pl.BlockSpec((pl.Squeezed(), D, tile), lambda b, t: (b, 0, t)),
                pl.BlockSpec((pl.Squeezed(), 1, tile), lambda b, t: (b, 0, t)),
                pl.BlockSpec((pl.Squeezed(), 1, tile), lambda b, t: (b, 0, t)),
            ],
            out_specs=pl.BlockSpec((pl.Squeezed(), 1, tile),
                                   lambda b, t: (b, 0, t)),
        ),
        compiler_params=pltpu.CompilerParams(
            dimension_semantics=("parallel", "parallel"),
            vmem_limit_bytes=32 * 1024 * 1024,
        ),
    )(cost_f, raw_f, conf_f)

    return out_flat[:, :, :S].reshape(B, 1, H, W)


def disp_regressor_ref(cost, raw_disp, conf, fusion=True):
    """Pure-JAX reference matching the PyTorch module."""
    prob = jax.nn.softmax(-cost, axis=1)
    D = cost.shape[1]
    cand = jnp.arange(D, dtype=jnp.float32).reshape(1, D, 1, 1)
    prelim = jnp.sum(cand * prob, axis=1, keepdims=True)
    if fusion:
        prelim = (1.0 - conf) * prelim + conf * raw_disp
    return prelim


if __name__ == "__main__":
    # Small shapes consistent with the module: cost volume with max_disp_at_scale=8.
    B, D, H, W = 2, 8, 16, 16
    key = jax.random.PRNGKey(0)
    k_cost, k_raw, k_conf = jax.random.split(key, 3)

    cost = jax.random.normal(k_cost, (B, D, H, W), dtype=jnp.float32)
    raw_disp = jax.random.uniform(k_raw, (B, 1, H, W), dtype=jnp.float32) * (D - 1)
    conf = jax.random.uniform(k_conf, (B, 1, H, W), dtype=jnp.float32)

    out = disp_regressor(cost, raw_disp, conf)
    out = jax.block_until_ready(out)

    ref = disp_regressor_ref(cost, raw_disp, conf)
    assert out.shape == (B, 1, H, W)
    assert jnp.allclose(out, ref, atol=1e-5, rtol=1e-5), "mismatch vs reference"

    print("KERNEL_OK")
</pallas_src>

<mosaic_0001>
module attributes {stable_mosaic.version = 11 : i64} {
  func.func @_disp_regressor_kernel(%arg0: i32, %arg1: i32, %arg2: memref<1x8x256xf32, #tpu.memory_space<vmem>>, %arg3: memref<1x1x256xf32, #tpu.memory_space<vmem>>, %arg4: memref<1x1x256xf32, #tpu.memory_space<vmem>>, %arg5: memref<1x1x256xf32, #tpu.memory_space<vmem>>) attributes {dimension_semantics = [#tpu.dimension_semantics<parallel>, #tpu.dimension_semantics<parallel>], iteration_bounds = array<i64: 2, 1>, scalar_prefetch = 0 : i64, scratch_operands = 0 : i64, tpu.core_type = #tpu.core_type<tc>, window_params = [{transform_indices = @transform_0, window_bounds = array<i64: 1, 8, 256>}, {transform_indices = @transform_1, window_bounds = array<i64: 1, 1, 256>}, {transform_indices = @transform_2, window_bounds = array<i64: 1, 1, 256>}, {transform_indices = @transform_3, window_bounds = array<i64: 1, 1, 256>}]} {
    %c0 = arith.constant 0 : index
    %c0_0 = arith.constant 0 : index
    %c0_1 = arith.constant 0 : index
    %0 = vector.load %arg2[%c0, %c0_0, %c0_1] : memref<1x8x256xf32, #tpu.memory_space<vmem>>, vector<1x1x256xf32>
    %1 = vector.shape_cast %0 : vector<1x1x256xf32> to vector<1x256xf32>
    %cst = arith.constant 0.000000e+00 : f32
    %2 = vector.broadcast %cst : f32 to vector<1x256xf32>
    %3 = arith.subf %2, %1 : vector<1x256xf32>
    %c0_2 = arith.constant 0 : index
    %c1 = arith.constant 1 : index
    %c0_3 = arith.constant 0 : index
    %4 = vector.load %arg2[%c0_2, %c1, %c0_3] : memref<1x8x256xf32, #tpu.memory_space<vmem>>, vector<1x1x256xf32>
    %5 = vector.shape_cast %4 : vector<1x1x256xf32> to vector<1x256xf32>
    %cst_4 = arith.constant 0.000000e+00 : f32
    %6 = vector.broadcast %cst_4 : f32 to vector<1x256xf32>
    %7 = arith.subf %6, %5 : vector<1x256xf32>
    %8 = arith.maximumf %3, %7 : vector<1x256xf32>
    %c0_5 = arith.constant 0 : index
    %c2 = arith.constant 2 : index
    %c0_6 = arith.constant 0 : index
    %9 = vector.load %arg2[%c0_5, %c2, %c0_6] : memref<1x8x256xf32, #tpu.memory_space<vmem>>, vector<1x1x256xf32>
    %10 = vector.shape_cast %9 : vector<1x1x256xf32> to vector<1x256xf32>
    %cst_7 = arith.constant 0.000000e+00 : f32
    %11 = vector.broadcast %cst_7 : f32 to vector<1x256xf32>
    %12 = arith.subf %11, %10 : vector<1x256xf32>
    %13 = arith.maximumf %8, %12 : vector<1x256xf32>
    %c0_8 = arith.constant 0 : index
    %c3 = arith.constant 3 : index
    %c0_9 = arith.constant 0 : index
    %14 = vector.load %arg2[%c0_8, %c3, %c0_9] : memref<1x8x256xf32, #tpu.memory_space<vmem>>, vector<1x1x256xf32>
    %15 = vector.shape_cast %14 : vector<1x1x256xf32> to vector<1x256xf32>
    %cst_10 = arith.constant 0.000000e+00 : f32
    %16 = vector.broadcast %cst_10 : f32 to vector<1x256xf32>
    %17 = arith.subf %16, %15 : vector<1x256xf32>
    %18 = arith.maximumf %13, %17 : vector<1x256xf32>
    %c0_11 = arith.constant 0 : index
    %c4 = arith.constant 4 : index
    %c0_12 = arith.constant 0 : index
    %19 = vector.load %arg2[%c0_11, %c4, %c0_12] : memref<1x8x256xf32, #tpu.memory_space<vmem>>, vector<1x1x256xf32>
    %20 = vector.shape_cast %19 : vector<1x1x256xf32> to vector<1x256xf32>
    %cst_13 = arith.constant 0.000000e+00 : f32
    %21 = vector.broadcast %cst_13 : f32 to vector<1x256xf32>
    %22 = arith.subf %21, %20 : vector<1x256xf32>
    %23 = arith.maximumf %18, %22 : vector<1x256xf32>
    %c0_14 = arith.constant 0 : index
    %c5 = arith.constant 5 : index
    %c0_15 = arith.constant 0 : index
    %24 = vector.load %arg2[%c0_14, %c5, %c0_15] : memref<1x8x256xf32, #tpu.memory_space<vmem>>, vector<1x1x256xf32>
    %25 = vector.shape_cast %24 : vector<1x1x256xf32> to vector<1x256xf32>
    %cst_16 = arith.constant 0.000000e+00 : f32
    %26 = vector.broadcast %cst_16 : f32 to vector<1x256xf32>
    %27 = arith.subf %26, %25 : vector<1x256xf32>
    %28 = arith.maximumf %23, %27 : vector<1x256xf32>
    %c0_17 = arith.constant 0 : index
    %c6 = arith.constant 6 : index
    %c0_18 = arith.constant 0 : index
    %29 = vector.load %arg2[%c0_17, %c6, %c0_18] : memref<1x8x256xf32, #tpu.memory_space<vmem>>, vector<1x1x256xf32>
    %30 = vector.shape_cast %29 : vector<1x1x256xf32> to vector<1x256xf32>
    %cst_19 = arith.constant 0.000000e+00 : f32
    %31 = vector.broadcast %cst_19 : f32 to vector<1x256xf32>
    %32 = arith.subf %31, %30 : vector<1x256xf32>
    %33 = arith.maximumf %28, %32 : vector<1x256xf32>
    %c0_20 = arith.constant 0 : index
    %c7 = arith.constant 7 : index
    %c0_21 = arith.constant 0 : index
    %34 = vector.load %arg2[%c0_20, %c7, %c0_21] : memref<1x8x256xf32, #tpu.memory_space<vmem>>, vector<1x1x256xf32>
    %35 = vector.shape_cast %34 : vector<1x1x256xf32> to vector<1x256xf32>
    %cst_22 = arith.constant 0.000000e+00 : f32
    %36 = vector.broadcast %cst_22 : f32 to vector<1x256xf32>
    %37 = arith.subf %36, %35 : vector<1x256xf32>
    %38 = arith.maximumf %33, %37 : vector<1x256xf32>
    %cst_23 = arith.constant 0.000000e+00 : f32
    %39 = vector.broadcast %cst_23 : f32 to vector<1x256xf32>
    %cst_24 = arith.constant 0.000000e+00 : f32
    %40 = vector.broadcast %cst_24 : f32 to vector<1x256xf32>
    %c0_25 = arith.constant 0 : index
    %c0_26 = arith.constant 0 : index
    %c0_27 = arith.constant 0 : index
    %41 = vector.load %arg2[%c0_25, %c0_26, %c0_27] : memref<1x8x256xf32, #tpu.memory_space<vmem>>, vector<1x1x256xf32>
    %42 = vector.shape_cast %41 : vector<1x1x256xf32> to vector<1x256xf32>
    %cst_28 = arith.constant 0.000000e+00 : f32
    %43 = vector.broadcast %cst_28 : f32 to vector<1x256xf32>
    %44 = arith.subf %43, %42 : vector<1x256xf32>
    %45 = arith.subf %44, %38 : vector<1x256xf32>
    %46 = math.exp %45 : vector<1x256xf32>
    %47 = arith.addf %39, %46 : vector<1x256xf32>
    %c0_29 = arith.constant 0 : index
    %c1_30 = arith.constant 1 : index
    %c0_31 = arith.constant 0 : index
    %48 = vector.load %arg2[%c0_29, %c1_30, %c0_31] : memref<1x8x256xf32, #tpu.memory_space<vmem>>, vector<1x1x256xf32>
    %49 = vector.shape_cast %48 : vector<1x1x256xf32> to vector<1x256xf32>
    %cst_32 = arith.constant 0.000000e+00 : f32
    %50 = vector.broadcast %cst_32 : f32 to vector<1x256xf32>
    %51 = arith.subf %50, %49 : vector<1x256xf32>
    %52 = arith.subf %51, %38 : vector<1x256xf32>
    %53 = math.exp %52 : vector<1x256xf32>
    %54 = arith.addf %47, %53 : vector<1x256xf32>
    %cst_33 = arith.constant 1.000000e+00 : f32
    %55 = vector.broadcast %cst_33 : f32 to vector<1x256xf32>
    %56 = arith.mulf %55, %53 : vector<1x256xf32>
    %57 = arith.addf %40, %56 : vector<1x256xf32>
    %c0_34 = arith.constant 0 : index
    %c2_35 = arith.constant 2 : index
    %c0_36 = arith.constant 0 : index
    %58 = vector.load %arg2[%c0_34, %c2_35, %c0_36] : memref<1x8x256xf32, #tpu.memory_space<vmem>>, vector<1x1x256xf32>
    %59 = vector.shape_cast %58 : vector<1x1x256xf32> to vector<1x256xf32>
    %cst_37 = arith.constant 0.000000e+00 : f32
    %60 = vector.broadcast %cst_37 : f32 to vector<1x256xf32>
    %61 = arith.subf %60, %59 : vector<1x256xf32>
    %62 = arith.subf %61, %38 : vector<1x256xf32>
    %63 = math.exp %62 : vector<1x256xf32>
    %64 = arith.addf %54, %63 : vector<1x256xf32>
    %cst_38 = arith.constant 2.000000e+00 : f32
    %65 = vector.broadcast %cst_38 : f32 to vector<1x256xf32>
    %66 = arith.mulf %65, %63 : vector<1x256xf32>
    %67 = arith.addf %57, %66 : vector<1x256xf32>
    %c0_39 = arith.constant 0 : index
    %c3_40 = arith.constant 3 : index
    %c0_41 = arith.constant 0 : index
    %68 = vector.load %arg2[%c0_39, %c3_40, %c0_41] : memref<1x8x256xf32, #tpu.memory_space<vmem>>, vector<1x1x256xf32>
    %69 = vector.shape_cast %68 : vector<1x1x256xf32> to vector<1x256xf32>
    %cst_42 = arith.constant 0.000000e+00 : f32
    %70 = vector.broadcast %cst_42 : f32 to vector<1x256xf32>
    %71 = arith.subf %70, %69 : vector<1x256xf32>
    %72 = arith.subf %71, %38 : vector<1x256xf32>
    %73 = math.exp %72 : vector<1x256xf32>
    %74 = arith.addf %64, %73 : vector<1x256xf32>
    %cst_43 = arith.constant 3.000000e+00 : f32
    %75 = vector.broadcast %cst_43 : f32 to vector<1x256xf32>
    %76 = arith.mulf %75, %73 : vector<1x256xf32>
    %77 = arith.addf %67, %76 : vector<1x256xf32>
    %c0_44 = arith.constant 0 : index
    %c4_45 = arith.constant 4 : index
    %c0_46 = arith.constant 0 : index
    %78 = vector.load %arg2[%c0_44, %c4_45, %c0_46] : memref<1x8x256xf32, #tpu.memory_space<vmem>>, vector<1x1x256xf32>
    %79 = vector.shape_cast %78 : vector<1x1x256xf32> to vector<1x256xf32>
    %cst_47 = arith.constant 0.000000e+00 : f32
    %80 = vector.broadcast %cst_47 : f32 to vector<1x256xf32>
    %81 = arith.subf %80, %79 : vector<1x256xf32>
    %82 = arith.subf %81, %38 : vector<1x256xf32>
    %83 = math.exp %82 : vector<1x256xf32>
    %84 = arith.addf %74, %83 : vector<1x256xf32>
    %cst_48 = arith.constant 4.000000e+00 : f32
    %85 = vector.broadcast %cst_48 : f32 to vector<1x256xf32>
    %86 = arith.mulf %85, %83 : vector<1x256xf32>
    %87 = arith.addf %77, %86 : vector<1x256xf32>
    %c0_49 = arith.constant 0 : index
    %c5_50 = arith.constant 5 : index
    %c0_51 = arith.constant 0 : index
    %88 = vector.load %arg2[%c0_49, %c5_50, %c0_51] : memref<1x8x256xf32, #tpu.memory_space<vmem>>, vector<1x1x256xf32>
    %89 = vector.shape_cast %88 : vector<1x1x256xf32> to vector<1x256xf32>
    %cst_52 = arith.constant 0.000000e+00 : f32
    %90 = vector.broadcast %cst_52 : f32 to vector<1x256xf32>
    %91 = arith.subf %90, %89 : vector<1x256xf32>
    %92 = arith.subf %91, %38 : vector<1x256xf32>
    %93 = math.exp %92 : vector<1x256xf32>
    %94 = arith.addf %84, %93 : vector<1x256xf32>
    %cst_53 = arith.constant 5.000000e+00 : f32
    %95 = vector.broadcast %cst_53 : f32 to vector<1x256xf32>
    %96 = arith.mulf %95, %93 : vector<1x256xf32>
    %97 = arith.addf %87, %96 : vector<1x256xf32>
    %c0_54 = arith.constant 0 : index
    %c6_55 = arith.constant 6 : index
    %c0_56 = arith.constant 0 : index
    %98 = vector.load %arg2[%c0_54, %c6_55, %c0_56] : memref<1x8x256xf32, #tpu.memory_space<vmem>>, vector<1x1x256xf32>
    %99 = vector.shape_cast %98 : vector<1x1x256xf32> to vector<1x256xf32>
    %cst_57 = arith.constant 0.000000e+00 : f32
    %100 = vector.broadcast %cst_57 : f32 to vector<1x256xf32>
    %101 = arith.subf %100, %99 : vector<1x256xf32>
    %102 = arith.subf %101, %38 : vector<1x256xf32>
    %103 = math.exp %102 : vector<1x256xf32>
    %104 = arith.addf %94, %103 : vector<1x256xf32>
    %cst_58 = arith.constant 6.000000e+00 : f32
    %105 = vector.broadcast %cst_58 : f32 to vector<1x256xf32>
    %106 = arith.mulf %105, %103 : vector<1x256xf32>
    %107 = arith.addf %97, %106 : vector<1x256xf32>
    %c0_59 = arith.constant 0 : index
    %c7_60 = arith.constant 7 : index
    %c0_61 = arith.constant 0 : index
    %108 = vector.load %arg2[%c0_59, %c7_60, %c0_61] : memref<1x8x256xf32, #tpu.memory_space<vmem>>, vector<1x1x256xf32>
    %109 = vector.shape_cast %108 : vector<1x1x256xf32> to vector<1x256xf32>
    %cst_62 = arith.constant 0.000000e+00 : f32
    %110 = vector.broadcast %cst_62 : f32 to vector<1x256xf32>
    %111 = arith.subf %110, %109 : vector<1x256xf32>
    %112 = arith.subf %111, %38 : vector<1x256xf32>
    %113 = math.exp %112 : vector<1x256xf32>
    %114 = arith.addf %104, %113 : vector<1x256xf32>
    %cst_63 = arith.constant 7.000000e+00 : f32
    %115 = vector.broadcast %cst_63 : f32 to vector<1x256xf32>
    %116 = arith.mulf %115, %113 : vector<1x256xf32>
    %117 = arith.addf %107, %116 : vector<1x256xf32>
    %118 = tpu.reciprocal %114 : vector<1x256xf32> -> vector<1x256xf32>
    %119 = arith.mulf %117, %118 : vector<1x256xf32>
    %c0_64 = arith.constant 0 : index
    %c0_65 = arith.constant 0 : index
    %c0_66 = arith.constant 0 : index
    %120 = vector.load %arg4[%c0_64, %c0_65, %c0_66] : memref<1x1x256xf32, #tpu.memory_space<vmem>>, vector<1x1x256xf32>
    %121 = vector.shape_cast %120 : vector<1x1x256xf32> to vector<1x256xf32>
    %c0_67 = arith.constant 0 : index
    %c0_68 = arith.constant 0 : index
    %c0_69 = arith.constant 0 : index
    %122 = vector.load %arg3[%c0_67, %c0_68, %c0_69] : memref<1x1x256xf32, #tpu.memory_space<vmem>>, vector<1x1x256xf32>
    %123 = vector.shape_cast %122 : vector<1x1x256xf32> to vector<1x256xf32>
    %cst_70 = arith.constant 1.000000e+00 : f32
    %124 = vector.broadcast %cst_70 : f32 to vector<1x256xf32>
    %125 = arith.subf %124, %121 : vector<1x256xf32>
    %126 = arith.mulf %125, %119 : vector<1x256xf32>
    %127 = arith.mulf %121, %123 : vector<1x256xf32>
    %128 = arith.addf %126, %127 : vector<1x256xf32>
    %c0_71 = arith.constant 0 : index
    %c0_72 = arith.constant 0 : index
    %c0_73 = arith.constant 0 : index
    %129 = vector.load %arg5[%c0_71, %c0_72, %c0_73] : memref<1x1x256xf32, #tpu.memory_space<vmem>>, vector<1x1x256xf32>
    %130 = vector.shape_cast %129 : vector<1x1x256xf32> to vector<1x256xf32>
    %131 = vector.shape_cast %128 : vector<1x256xf32> to vector<1x1x256xf32>
    tpu.vector_store %arg5[%c0_71, %c0_72, %c0_73], %131 {strides = array<i32>} : memref<1x1x256xf32, #tpu.memory_space<vmem>>, vector<1x1x256xf32>,
    return
  }
  func.func @transform_0(%arg0: i32, %arg1: i32) -> (i32, i32, i32) {
    %c0_i32 = arith.constant 0 : i32
    %c0_i32_0 = arith.constant 0 : i32
    return %arg0, %c0_i32, %arg1 : i32, i32, i32
  }
  func.func @transform_1(%arg0: i32, %arg1: i32) -> (i32, i32, i32) {
    %c0_i32 = arith.constant 0 : i32
    %c0_i32_0 = arith.constant 0 : i32
    return %arg0, %c0_i32, %arg1 : i32, i32, i32
  }
  func.func @transform_2(%arg0: i32, %arg1: i32) -> (i32, i32, i32) {
    %c0_i32 = arith.constant 0 : i32
    %c0_i32_0 = arith.constant 0 : i32
    return %arg0, %c0_i32, %arg1 : i32, i32, i32
  }
  func.func @transform_3(%arg0: i32, %arg1: i32) -> (i32, i32, i32) {
    %c0_i32 = arith.constant 0 : i32
    %c0_i32_0 = arith.constant 0 : i32
    return %arg0, %c0_i32, %arg1 : i32, i32, i32
  }
}

</mosaic_0001>

<bundles_post_ra>
// kernel: tpu_custom_call.1
= control target key start
LH: loop header
LB: loop body
LE: loop exit
PB: predicated region body
PF: predicated region fallthrough
CT: control target
= control target key end

     0   :  { %8 = vsyncpa [#allocation3], 0  ;;  %s1026_s0 = inlined_call_operand.hbm [shape: f32[2,8,256], index: 0, kind: input, shape index: {}]   ;;  %s1027_s1 = inlined_call_operand.hbm [shape: f32[2,1,256], index: 1, kind: input, shape index: {}]   ;;  %s1028_s2 = inlined_call_operand.vmem [shape: f32[2,1,256], index: 2, kind: input, shape index: {}]   ;;  %s1029_s3 = inlined_call_operand.hbm [shape: f32[2,1,256], index: 3, kind: output, shape index: {}]  }
   0x1   :  { %10 = vsyncpa [#allocation3 + $0x1], 0 }
   0x2   :  { %11 = vsyncpa [#allocation6], 0 }
   0x3   :  { %13 = vsyncpa [#allocation6 + $0x1], 0 }
   0x4   :  { %14 = vsyncpa [#allocation4], 0 }
   0x5   :  { %16 = vsyncpa [#allocation4 + $0x1], 0  ;;  %s799_s12 = smov 0   ;;  %s801_s13 = smov 0  }
   0x6   :  { %s803_s14 = smov 0   ;;  %s805_s15 = smov 0  }
   0x7   :  { %s807_s16 = smov 0   ;;  %s809_s17 = smov 0  }
   0x8 LB: > { %s513_s18 = sadd.s32 4294967295, %s774_s17   ;;  %s514_s19 = sadd.s32 4294967294, %s774_s17   ;;  %s774_s17 = sphi %s809_s17, %s22_s17   ;;  %s770_s16 = sphi %s807_s16, %s1049_s16   ;;  %s766_s15 = sphi %s805_s15, %s1048_s15   ;;  %s762_s14 = sphi %s803_s14, %s1047_s14   ;;  %s758_s13 = sphi %s801_s13, %s1046_s13   ;;  %s754_s12 = sphi %s799_s12, %s1045_s12  }
   0x9   : > { %s34_s20 = sadd.s32 1, %s770_s16  ;;  %s43_s21 = sadd.s32 1, %s762_s14 }
   0xa   : > { %p36_p0 = scmp.ge.s32.totalorder %s34_s20, 2  ;;  %p50_p1 = scmp.ne.s32.totalorder %s762_s14, %s758_s13 }
   0xb   : > { %p51_p2 = scmp.eq.s32.totalorder %s774_s17, 0  ;;  %p56_p3 = scmp.ne.s32.totalorder %s758_s13, %s754_s12 }
   0xc   : > { %s1051_s20 = smov (%p36_p0, %s34_s20), 0  ;;  %p57_p5 = scmp.eq.s32.totalorder %s513_s18, 0 }
   0xd   : > { %p840_p4 = por %p51_p2, %p50_p1  ;;  %s38_s23 = ssub.s32 %s770_s16, %s1051_s20 }
   0xe   : > { %p138_p6 = scmp.eq.s32.totalorder %s513_s18, 1  ;;  %p41_p7 = scmp.eq.s32.totalorder %s38_s23, 0 }
   0xf   : > { %p846_p8 = por %p57_p5, %p56_p3  ;;  %p144_p10 = scmp.eq.s32.totalorder %s514_s19, 1 }
  0x10   : > { %p850_p9 = por %p138_p6, %p50_p1  ;;  %p560_p13 = scmp.lt.s32.totalorder %s774_s17, 2 }
  0x11   : > { %s1033_s24 = scalar_select %p846_p8, 1, 0 }
  0x12   : > { %s1034_s25 = scalar_select %p850_p9, 1, 0 }
  0x13   : > { %s855_s26 = scalar_select %p41_p7, %s762_s14, %s43_s21  }
  0x14   : > { %p857_p11 = por %p144_p10, %p56_p3  ;;  %s864_s28 = sand.u32 1, %s762_s14  }
  0x15   : > { %s517_s29 = sshll.u32 %s864_s28, 4  ;;  %s540_s30 = sshll.u32 %s770_s16, 8 }
  0x16   : > { %s1035_s27 = scalar_select %p857_p11, 1, 0 }
  0x17   : > { %s871_s6 = scalar_lea.hbm %s1026_s0, %s540_s30  ;;  %s168_s7 = scalar_lea.vmem [#allocation2], %s517_s29 }
  0x18   : > { %s178_s8 = sshll.u32 %s168_s7, 4  ;;  %p877_p0 = pnand %p560_p13, %p840_p4  ;;  %s873_s8 = int_to_ptr.vmem [resolvable:$true] %s178_s8 }
  0x19   : > { %s165_s10 = scalar_lea.sflag [#allocation3], %s864_s28  ;;  %s628_s11 = scalar_lea.hbm %s871_s6, 256 }
  0x1a   : > { %p629_p3 = scmp.ne.s32.totalorder %s871_s6, %s628_s11  ;;  %p630_p5 = pneg %p877_p0 }
  0x1b   : > { %s633_s21 = scalar_lea.hbm %s1026_s0, 512  ;;  %p634_p4 = scmp.lt.u32.totalorder %s871_s6, %s1026_s0 }
  0x1c   : > { %p631_p6 = pnand %p630_p5, %p629_p3  ;;  %p635_p10 = scmp.lt.u32.totalorder %s633_s21, %s628_s11 }
  0x1d   : > { %p637_p12 = scmp.lt.u32.totalorder %s628_s11, %s871_s6 }
  0x1e   : > { %p632_p7 = pneg %p631_p6  ;;  %p636_p13 = por %p635_p10, %p634_p4 }
  0x20   : > { %p638_p1 = por %p637_p12, %p636_p13 }
  0x22   : > { %p639_p2 = pnand %p638_p1, %p632_p7 }
  0x24   : > { %642 = shalt.err (!%p639_p2)
}
  0x25   : > { %s643_s29 = scalar_lea.vmem %s873_s8, 256  ;;  %s776_s30 = smov [#allocation2]  }
  0x26   : > { %p644_p3 = scmp.ne.s32.totalorder %s873_s8, %s643_s29  ;;  %s648_s4 = sshll.u32 %s776_s30, 4  ;;  %s649_s4 = int_to_ptr.vmem [resolvable:$false] %s648_s4 }
  0x27   : > { %s650_s5 = scalar_lea.vmem %s649_s4, 512  ;;  %p651_p9 = scmp.lt.s32.totalorder %s873_s8, %s649_s4 }
  0x28   : > { %p646_p6 = pnand %p644_p3, %p630_p5  ;;  %p652_p4 = scmp.lt.s32.totalorder %s650_s5, %s643_s29 }
  0x2a   : > { %p647_p11 = pneg %p646_p6  ;;  %p653_p10 = por %p652_p4, %p651_p9 }
  0x2c   : > { %p654_p12 = pnand %p653_p10, %p647_p11 }
  0x2e   : > { %657 = shalt.err (!%p654_p12)
}
  0x2f   : > { %552 = dma.hbm_to_vmem [thread:$0]  (!%p877_p0), %s871_s6, 256, %s873_s8, %s165_s10  }
  0x30   : > { %p1037_p1 = scmp.lt.s32.totalorder %s774_s17, 3  ;;  %p1038_p2 = scmp.ge.s32.totalorder %s774_s17, 1 }
  0x31   : > { %s520_s11 = sshll.u32 %s864_s28, 1  ;;  %s541_s18 = sshll.u32 %s770_s16, 5 }
  0x32   : > { %p913_p7 = pnand %p1038_p2, %p1037_p1  ;;  %s922_s22 = scalar_lea.hbm %s1027_s1, %s541_s18 }
  0x33   : > { %s189_s23 = scalar_lea.vmem [#allocation5], %s520_s11  ;;  %s186_s6 = scalar_lea.sflag [#allocation6], %s864_s28 }
  0x34   : > { %s1039_s7 = scalar_select %p913_p7, 1, 0 }
  0x35   : > { %s199_s29 = sshll.u32 %s189_s23, 4  ;;  %s658_s8 = scalar_lea.hbm %s922_s22, 32  ;;  %s200_s29 = int_to_ptr.vmem [resolvable:$true] %s199_s29 }
  0x36   : > { %p659_p9 = scmp.ne.s32.totalorder %s922_s22, %s658_s8  ;;  %s663_s4 = scalar_lea.hbm %s1027_s1, 64 }
  0x37   : > { %p664_p3 = scmp.lt.u32.totalorder %s922_s22, %s1027_s1  ;;  %p665_p6 = scmp.lt.u32.totalorder %s663_s4, %s658_s8 }
  0x38   : > { %p661_p11 = pnand %p659_p9, %p630_p5  ;;  %p667_p10 = scmp.lt.u32.totalorder %s658_s8, %s922_s22 }
  0x39   : > { %p666_p4 = por %p665_p6, %p664_p3 }
  0x3a   : > { %p662_p13 = pneg %p661_p11 }
  0x3b   : > { %p668_p12 = por %p667_p10, %p666_p4 }
  0x3d   : > { %p669_p1 = pnand %p668_p12, %p662_p13 }
  0x3f   : > { %672 = shalt.err (!%p669_p1)
}
  0x40   : > { %s673_s28 = scalar_lea.vmem %s200_s29, 32  ;;  %s777_s11 = smov [#allocation5]  }
  0x41   : > { %p674_p2 = scmp.ne.s32.totalorder %s200_s29, %s673_s28  ;;  %s678_s19 = sshll.u32 %s777_s11, 4  ;;  %s679_s19 = int_to_ptr.vmem [resolvable:$false] %s678_s19 }
  0x42   : > { %s680_s21 = scalar_lea.vmem %s679_s19, 64  ;;  %p681_p8 = scmp.lt.s32.totalorder %s200_s29, %s679_s19 }
  0x43   : > { %p676_p9 = pnand %p674_p2, %p630_p5  ;;  %p682_p7 = scmp.lt.s32.totalorder %s680_s21, %s673_s28 }
  0x45   : > { %p677_p11 = pneg %p676_p9  ;;  %p683_p3 = por %p682_p7, %p681_p8 }
  0x47   : > { %p684_p6 = pnand %p683_p3, %p677_p11 }
  0x49   : > { %687 = shalt.err (!%p684_p6)
}
  0x4a   : > { %555 = dma.hbm_to_vmem [thread:$0]  (!%p877_p0), %s922_s22, 32, %s200_s29, %s186_s6  }
  0x4b   : > { %p1040_p13 = scmp.ne.s32.totalorder %s1039_s7, 0 }
  0x4c   : > { %s947_s23 = sand.u32 (!%p1040_p13), 1, %s758_s13   ;;  %p1041_p5 = scmp.ne.s32.totalorder (!%p1040_p13), %s1033_s24, 0 }
  0x4d   : > { %220 = sbr.rel (%p1040_p13) target bundleno = 167 (0xa7), region = 32  ;;  %s524_s8 = sshll.u32 (!%p1040_p13), %s947_s23, 4 }
  0x4e   : > { %s223_s10 = scalar_lea.sflag (!%p1040_p13), [#allocation3], %s947_s23  ;;  %s226_s30 = scalar_lea.vmem (!%p1040_p13), [#allocation2], %s524_s8 }
  0x54   : > { %741 = dma.done.wait (%p1041_p5), %s223_s10, 256  }
  0x55   : > { %743 = vsyncadd (%p1041_p5), %s223_s10, 4294967040  ;;  %s525_s9 = sshll.u32 %s947_s23, 1  ;;  %s232_s7 = scalar_lea.sflag [#allocation6], %s947_s23 }
  0x56   : > { %s959_s22 = scalar_lea.vmem [#allocation5], %s525_s9 }
  0x57   : > { %745 = dma.done.wait (%p1041_p5), %s232_s7, 32  }
  0x58   : > { %747 = vsyncadd (%p1041_p5), %s232_s7, 4294967264  ;;  %v283_v0 = vld [vmem:[%s226_s30] ss:$8 sm:$0x3]  ;;  %p274_p8 = scmp.lt.s32.totalorder %s766_s15, 1  ;;  %s270_s18 = scalar_lea.vmem [#allocation7], %s525_s9 }
  0x59   : > { %v528_v1 = vld [vmem:[%s226_s30 + $0x1] ss:$8 sm:$0x3]  ;;  %v284_v2 = vsub.f32 0.0, %v283_v0  ;;  %s388_s28 = sshll.u32 %s270_s18, 4  ;;  %s542_s11 = sshll.u32 %s766_s15, 5  ;;  %s974_s28 = int_to_ptr.vmem [resolvable:$true] %s388_s28 }
  0x5a   : > { %v287_v3 = vsub.f32 0.0, %v528_v1  ;;  %v529_v4 = vld [vmem:[%s226_s30 + $0x2] ss:$8 sm:$0x3]  ;;  %s275_s24 = scalar_select %p274_p8, %s766_s15, 1 }
  0x5b   : > { %v291_v5 = vsub.f32 0.0, %v529_v4  ;;  %v530_v6 = vld [vmem:[%s226_s30 + $0x3] ss:$8 sm:$0x3]  ;;  %s979_s8 = scalar_lea.hbm %s1029_s3, %s542_s11  ;;  %s372_s10 = scalar_lea.sflag [#allocation4], %s947_s23 }
  0x5c   : > { %v288_v7 = vmax.f32 %v284_v2, %v287_v3  ;;  %v295_v8 = vsub.f32 0.0, %v530_v6  ;;  %v531_v9 = vld [vmem:[%s226_s30 + $0x4] ss:$8 sm:$0x3]  ;;  %s527_s29 = sshll.u32 %s275_s24, 1  ;;  %v366_v6 = vlaneseq  ;;  %p1042_p7 = scmp.ne.s32.totalorder %s1034_s25, 0 }
  0x5d   : > { %v532_v10 = vld [vmem:[%s226_s30 + $0x5] ss:$8 sm:$0x3]  ;;  %v299_v12 = vsub.f32 0.0, %v531_v9  ;;  %s280_s5 = scalar_lea.vmem %s1028_s2, %s527_s29  ;;  %s778_s15 = smov [#allocation7]  }
  0x5e   : > { %v292_v11 = vmax.f32 %v288_v7, %v291_v5  ;;  %v533_v13 = vld [vmem:[%s226_s30 + $0x6] ss:$8 sm:$0x3]  ;;  %v303_v15 = vsub.f32 0.0, %v532_v10  ;;  %v360_v1 = vld [vmem:[%s280_s5] sm:$0x3] }
  0x5f   : > { %v534_v16 = vld [vmem:[%s226_s30 + $0x7] ss:$8 sm:$0x3]  ;;  %v307_v18 = vsub.f32 0.0, %v533_v13  ;;  %v362_v4 = vsub.f32 1.0, %v360_v1  ;;  %vm368_vm0 = vcmp.lt.s32.totalorder %v366_v6, 256 }
  0x60   : > { %v296_v14 = vmax.f32 %v292_v11, %v295_v8  ;;  %v311_v20 = vsub.f32 0.0, %v534_v16  ;;  %s688_s30 = scalar_lea.vmem %s974_s28, 32  ;;  %s692_s9 = sshll.u32 %s778_s15, 4  ;;  %s693_s9 = int_to_ptr.vmem [resolvable:$false] %s692_s9 }
  0x61   : > { %p689_p0 = scmp.ne.s32.totalorder %s974_s28, %s688_s30  ;;  %s694_s7 = scalar_lea.vmem %s693_s9, 64 }
  0x62   : > { %v300_v17 = vmax.f32 %v296_v14, %v299_v12  ;;  %p695_p12 = scmp.lt.s32.totalorder %s974_s28, %s693_s9  ;;  %p696_p1 = scmp.lt.s32.totalorder %s694_s7, %s688_s30 }
  0x63   : > { %p690_p4 = pnand %p689_p0, %p1042_p7 }
  0x64   : > { %v304_v19 = vmax.f32 %v300_v17, %v303_v15  ;;  %p697_p2 = por %p696_p1, %p695_p12 }
  0x65   : > { %p691_p10 = pneg %p690_p4 }
  0x66   : > { %v308_v21 = vmax.f32 %v304_v19, %v307_v18 }
  0x67   : > { %p698_p9 = pnand %p697_p2, %p691_p10 }
  0x68   : > { %v312_v22 = vmax.f32 %v308_v21, %v311_v20 }
  0x6a   : > { %v313_v23 = vsub.f32 %v284_v2, %v312_v22  ;;  %v317_v24 = vsub.f32 %v287_v3, %v312_v22  ;;  %v322_v25 = vsub.f32 %v291_v5, %v312_v22  ;;  %v328_v26 = vsub.f32 %v295_v8, %v312_v22  ;;  %v361_v3 = vld [vmem:[%s959_s22] sm:$0x3] }
  0x6b   : > { %v334_v27 = vsub.f32 %v299_v12, %v312_v22  ;;  %v340_v32 = vsub.f32 %v303_v15, %v312_v22  ;;  %v346_v34 = vsub.f32 %v307_v18, %v312_v22  ;;  %v352_v36 = vsub.f32 %v311_v20, %v312_v22 }
  0x6c   : > { %v314_v28 = vmul.f32 1.442695, %v313_v23  ;;  %v318_v29 = vmul.f32 1.442695, %v317_v24  ;;  %v323_v30 = vmul.f32 1.442695, %v322_v25  ;;  %v364_v8 = vmul.f32 %v361_v3, %v360_v1 }
  0x6d   : > { %v329_v31 = vmul.f32 1.442695, %v328_v26  ;;  %v335_v33 = vmul.f32 1.442695, %v334_v27  ;;  %v341_v35 = vmul.f32 1.442695, %v340_v32 }
  0x6e   : > { %610 = vpow2.f32 %v314_v28  ;;  %v347_v37 = vmul.f32 1.442695, %v346_v34  ;;  %v353_v38 = vmul.f32 1.442695, %v352_v36 }
  0x6f   : > { %612 = vpow2.f32 %v318_v29 }
  0x70   : > { %614 = vpow2.f32 %v323_v30 }
  0x71   : > { %616 = vpow2.f32 %v329_v31 }
  0x72   : > { %618 = vpow2.f32 %v335_v33 }
  0x73   : > { %620 = vpow2.f32 %v341_v35 }
  0x74   : > { %622 = vpow2.f32 %v347_v37 }
  0x75   : > { %624 = vpow2.f32 %v353_v38 }
  0x78   : > { %v611_v39 = vpop.eup %610 }
  0x79   : > { %v613_v40 = vpop.eup %612 }
  0x7a   : > { %v615_v41 = vpop.eup %614  ;;  %v320_v42 = vadd.f32 %v613_v40, %v611_v39 }
  0x7b   : > { %v617_v43 = vpop.eup %616  ;;  %v326_v44 = vmul.f32 2.0, %v615_v41 }
  0x7c   : > { %v325_v45 = vadd.f32 %v615_v41, %v320_v42  ;;  %v332_v46 = vmul.f32 3.0, %v617_v43  ;;  %v619_v47 = vpop.eup %618 }
  0x7d   : > { %v327_v48 = vadd.f32 %v613_v40, %v326_v44  ;;  %v621_v50 = vpop.eup %620  ;;  %v338_v52 = vmul.f32 4.0, %v619_v47 }
  0x7e   : > { %v331_v49 = vadd.f32 %v617_v43, %v325_v45  ;;  %v623_v54 = vpop.eup %622  ;;  %v344_v58 = vmul.f32 5.0, %v621_v50 }
  0x7f   : > { %v333_v51 = vadd.f32 %v332_v46, %v327_v48  ;;  %v625_v56 = vpop.eup %624  ;;  %v350_v62 = vmul.f32 6.0, %v623_v54 }
  0x80   : > { %v337_v53 = vadd.f32 %v619_v47, %v331_v49  ;;  %v356_v0 = vmul.f32 7.0, %v625_v56 }
  0x81   : > { %v339_v57 = vadd.f32 %v338_v52, %v333_v51 }
  0x82   : > { %v343_v55 = vadd.f32 %v621_v50, %v337_v53 }
  0x83   : > { %v345_v61 = vadd.f32 %v344_v58, %v339_v57 }
  0x84   : > { %v349_v59 = vadd.f32 %v623_v54, %v343_v55 }
  0x85   : > { %v351_v63 = vadd.f32 %v350_v62, %v345_v61 }
  0x86   : > { %v355_v60 = vadd.f32 %v625_v56, %v349_v59 }
  0x87   : > { %v357_v2 = vadd.f32 %v356_v0, %v351_v63 }
  0x88   : > { %626 = vrcp.f32 %v355_v60 }
  0x92   : > { %v627_v5 = vpop.eup %626 }
  0x93   : > { %v359_v7 = vmul.f32 %v627_v5, %v357_v2 }
  0x95   : > { %v363_v9 = vmul.f32 %v362_v4, %v359_v7 }
  0x97   : > { %v365_v10 = vadd.f32 %v364_v8, %v363_v9 }
  0x99   : > { %370 = vst.msk [vmem:[%s270_s18] sm:$0x3] %vm368_vm0, %v365_v10 }
  0x9a   : > { %701 = shalt.err (!%p698_p9)
}
  0x9b   : > { %s702_s23 = scalar_lea.hbm %s979_s8, 32  ;;  %s706_s29 = scalar_lea.hbm %s1029_s3, 64 }
  0x9c   : > { %p703_p11 = scmp.ne.s32.totalorder %s979_s8, %s702_s23  ;;  %p707_p13 = scmp.lt.u32.totalorder %s979_s8, %s1029_s3 }
  0x9d   : > { %p708_p5 = scmp.lt.u32.totalorder %s706_s29, %s702_s23  ;;  %p710_p0 = scmp.lt.u32.totalorder %s702_s23, %s979_s8 }
  0x9e   : > { %p704_p3 = pnand %p703_p11, %p1042_p7 }
  0x9f   : > { %p709_p8 = por %p708_p5, %p707_p13 }
  0xa0   : > { %p705_p6 = pneg %p704_p3 }
  0xa1   : > { %p711_p4 = por %p710_p0, %p709_p8 }
  0xa3   : > { %p712_p10 = pnand %p711_p4, %p705_p6 }
  0xa5   : > { %715 = shalt.err (!%p712_p10)
}
  0xa6   : > { %547 = dma.vmem_to_hbm [thread:$0]  (%p1042_p7), %s974_s28, 32, %s979_s8, %s372_s10  }
  0xa7 PF: > { %s400_s5 = sand.u32 1, %s754_s12   ;;  %p1043_p12 = scmp.ne.s32.totalorder %s1035_s27, 0 }
  0xa8   : > { %p1044_p1 = scmp.ge.s32.totalorder %s774_s17, 2  ;;  %s401_s18 = scalar_lea.sflag [#allocation4], %s400_s5 }
  0xaa   : > { %p557_p2 = pnand %p1044_p1, %p1043_p12 }
  0xac   : > { %749 = dma.done.wait (!%p557_p2), %s401_s18, 32  }
  0xad   : > { %751 = vsyncadd (!%p557_p2), %s401_s18, 4294967264  ;;  %s22_s17 = sadd.s32 1, %s774_s17   ;;  %s1045_s12 = smov %s758_s13 }
  0xae   : > { %p19_p9 = scmp.ge.s32.totalorder %s22_s17, 4   ;;  %s1046_s13 = smov %s762_s14 }
  0xaf   : > { %s1047_s14 = smov %s855_s26  ;;  %s1048_s15 = smov %s770_s16 }
  0xb0   : > { %s1049_s16 = smov %s1051_s20  ;;  %21 = sbr.rel (!%p19_p9) target bundleno = 8 (0x8), region = 100 }
  0xb7   :  { %406 = vsyncpa [#allocation3], 1 }
  0xb8   :  { %408 = vsyncpa [#allocation3 + $0x1], 1 }
  0xb9   :  { %409 = vsyncpa [#allocation6], 1 }
  0xba   :  { %411 = vsyncpa [#allocation6 + $0x1], 1 }
  0xbb   :  { %412 = vsyncpa [#allocation4], 1 }
  0xbc   :  { %414 = vsyncpa [#allocation4 + $0x1], 1 }

</bundles_post_ra>
